<compile_context>
chip_gen: v6e
topology: v6e:2x2x1
jax: 0.10.0
libtpu: 0.0.40
codegen_flags: <defaults>
</compile_context>

<pallas_src>
import math
from functools import partial

import numpy as np
import jax
import jax.numpy as jnp
from jax.experimental import pallas as pl
from jax.experimental.pallas import tpu as pltpu


def _upsample_kernel(x_ref, p_ref, o_ref, *, s_h, sw_out, precision):
    # x_ref: (TILE_R, W)        one input row per kernel row
    # p_ref: (W, s_w*W)         constant 0/1 width-replication matrix (resident)
    # o_ref: (TILE_R, s_h*s_w*W) packed output row = s_h copies of the upsampled row
    y = jnp.dot(
        x_ref[...], p_ref[...],
        preferred_element_type=jnp.float32,
        precision=precision,
    ).astype(o_ref.dtype)
    # Height replication: s_h static lane-slice stores (no extra MXU flops,
    # no lane relayout).
    for k in range(s_h):
        o_ref[:, k * sw_out:(k + 1) * sw_out] = y


_P_CACHE = {}


def _placement_matrix(W, s_w, dtype):
    """Constant 0/1 matrix (W, s_w*W): column l reads input lane l // s_w."""
    key = (W, s_w, jnp.dtype(dtype).name)
    if key not in _P_CACHE:
        cols = np.arange(s_w * W)
        src = cols // s_w
        p_np = (np.arange(W)[:, None] == src[None, :]).astype(np.float32)
        _P_CACHE[key] = jnp.asarray(p_np).astype(dtype)
    return _P_CACHE[key]


def _choose_tile_rows(M, L, out_itemsize, target_out_bytes=2 * 1024 * 1024):
    """Rows per grid step: multiple of 8, ~2 MiB output tile, capped at M."""
    rows = target_out_bytes // max(1, L * out_itemsize)
    rows = max(8, (rows // 8) * 8)
    if rows >= M:
        return M            # single step; block == full array dims is always legal
    return rows


def upsampling_nearest2d(x_nchw, scale_factor=2.0):
    """Pallas implementation of UpsamplingNearest2d.forward (NCHW in / NCHW out)."""
    N, C, H, W = x_nchw.shape

    # recompute_scale_factor=True semantics: out = floor(in * scale); nearest
    # source index = floor(dst * in / out).  For integer effective scales this
    # is exact replication, which is what the kernel implements.
    out_h = int(math.floor(H * scale_factor))
    out_w = int(math.floor(W * scale_factor))
    assert out_h % H == 0 and out_w % W == 0, (
        "kernel supports integer effective scale factors only")
    s_h, s_w = out_h // H, out_w // W
    # TODO(synk): fractional effective scale factors (non-uniform nearest index map).

    in_dtype = x_nchw.dtype
    if in_dtype == jnp.bfloat16:
        # Native width: 0/1 matmul is exact in bf16 with f32 accumulation.
        compute_dtype, precision, passes = jnp.bfloat16, jax.lax.Precision.DEFAULT, 1
    elif in_dtype == jnp.float32:
        # HIGHEST keeps the gather-through-MXU bit-exact for f32.
        compute_dtype, precision, passes = jnp.float32, jax.lax.Precision.HIGHEST, 6
    else:
        # TODO(synk): non-f32/bf16 dtypes round-trip through f32 (exact only for
        # values representable in f32).
        compute_dtype, precision, passes = jnp.float32, jax.lax.Precision.HIGHEST, 6

    M = N * C * H                 # one input image row per kernel row
    sw_out = s_w * W              # width-upsampled row (lanes)
    L = s_h * sw_out              # packed output row = s_h full output rows

    # Contiguous (free) reshape: (N, C, H, W) -> (M, W).
    x2 = x_nchw.reshape(M, W)
    if x2.dtype != compute_dtype:
        x2 = x2.astype(compute_dtype)

    P = _placement_matrix(W, s_w, compute_dtype)

    in_itemsize = jnp.dtype(compute_dtype).itemsize
    out_itemsize = jnp.dtype(in_dtype).itemsize
    TILE_R = _choose_tile_rows(M, L, out_itemsize)
    grid = pl.cdiv(M, TILE_R)

    kernel = partial(_upsample_kernel, s_h=s_h, sw_out=sw_out, precision=precision)

    # Real schedule: input read once, output written once, P resident.
    flops = 2 * M * W * sw_out * passes
    bytes_accessed = (M * W * in_itemsize            # input, read once
                      + W * sw_out * in_itemsize     # P, resident
                      + M * L * out_itemsize)        # output, written once

    out2 = pl.pallas_call(
        kernel,
        out_shape=jax.ShapeDtypeStruct((M, L), in_dtype),
        grid_spec=pltpu.PrefetchScalarGridSpec(
            num_scalar_prefetch=0,
            grid=(grid,),
            in_specs=[
                pl.BlockSpec((TILE_R, W), lambda i: (i, 0)),
                pl.BlockSpec((W, sw_out), lambda i: (0, 0)),
            ],
            out_specs=pl.BlockSpec((TILE_R, L), lambda i: (i, 0)),
        ),
        compiler_params=pltpu.CompilerParams(
            dimension_semantics=("parallel",),
            # Explicit budget; ~5 MiB actual use fits every generation (incl. v7x).
            vmem_limit_bytes=32 * 1024 * 1024),
        cost_estimate=pl.CostEstimate(
            flops=flops, transcendentals=0, bytes_accessed=bytes_accessed),
    )(x2, P)

    # Contiguous (free) reshapes back to NCHW:
    # (M, L) -> (N, C, H, s_h, s_w*W) -> (N, C, s_h*H, s_w*W)
    return out2.reshape(N, C, H, s_h, out_w).reshape(N, C, out_h, out_w)


def reference_forward(x, scale_factor=2.0):
    """Pure-JAX reference matching PyTorch nearest w/ recompute_scale_factor=True."""
    N, C, H, W = x.shape
    out_h = int(math.floor(H * scale_factor))
    out_w = int(math.floor(W * scale_factor))
    rows = (jnp.arange(out_h) * H) // out_h
    cols = (jnp.arange(out_w) * W) // out_w
    return x[:, :, rows, :][:, :, :, cols]


if __name__ == "__main__":
    # Small shapes consistent with the module (NCHW): batch=2, channels=4, 16x16.
    N, C, H, W = 2, 4, 16, 16
    key = jax.random.PRNGKey(0)
    x = jax.random.normal(key, (N, C, H, W), dtype=jnp.float32)

    # f32 path (HIGHEST-precision placement matmul, bit-exact).
    out = jax.block_until_ready(upsampling_nearest2d(x, scale_factor=2.0))
    ref = reference_forward(x, scale_factor=2.0)
    assert out.shape == (N, C, 2 * H, 2 * W), out.shape
    assert jnp.allclose(out, ref, rtol=1e-6, atol=1e-6), float(jnp.max(jnp.abs(out - ref)))

    # bf16 path (native dtype, no f32 upcast -> half the HBM traffic); exact copy.
    xb = x.astype(jnp.bfloat16)
    outb = jax.block_until_ready(upsampling_nearest2d(xb, scale_factor=2.0))
    refb = reference_forward(xb, scale_factor=2.0)
    assert outb.dtype == jnp.bfloat16
    assert bool(jnp.all(outb == refb))

    print("KERNEL_OK")
</pallas_src>

<mosaic_0001>
module attributes {stable_mosaic.version = 11 : i64} {
  func.func @_upsample_kernel(%arg0: i32, %arg1: memref<128x16xf32, #tpu.memory_space<vmem>>, %arg2: memref<16x32xf32, #tpu.memory_space<vmem>>, %arg3: memref<128x64xf32, #tpu.memory_space<vmem>>) attributes {dimension_semantics = [#tpu.dimension_semantics<parallel>], iteration_bounds = array<i64: 1>, scalar_prefetch = 0 : i64, scratch_operands = 0 : i64, tpu.core_type = #tpu.core_type<tc>, window_params = [{transform_indices = @transform_0, window_bounds = array<i64: 128, 16>}, {pipeline_mode = #tpu.pipeline_mode<synchronous>, transform_indices = @transform_1, window_bounds = array<i64: 16, 32>}, {transform_indices = @transform_2, window_bounds = array<i64: 128, 64>}]} {
    %c0 = arith.constant 0 : index
    %c0_0 = arith.constant 0 : index
    %0 = vector.load %arg1[%c0, %c0_0] : memref<128x16xf32, #tpu.memory_space<vmem>>, vector<128x16xf32>
    %c0_1 = arith.constant 0 : index
    %c0_2 = arith.constant 0 : index
    %1 = vector.load %arg2[%c0_1, %c0_2] : memref<16x32xf32, #tpu.memory_space<vmem>>, vector<16x32xf32>
    %cst = arith.constant dense<0.000000e+00> : vector<128x32xf32>
    %2 = tpu.matmul %0, %1, %cst {dimension_numbers = #tpu.dot_dimension_numbers<[1], [0], [0], [1], [0, 0, 1, 1], [], []>, precision = #tpu.contract_precision<fp32>} : vector<128x16xf32>, vector<16x32xf32>, vector<128x32xf32> -> vector<128x32xf32>
    %c0_3 = arith.constant 0 : index
    %c0_4 = arith.constant 0 : index
    %3 = vector.load %arg3[%c0_3, %c0_4] : memref<128x64xf32, #tpu.memory_space<vmem>>, vector<128x32xf32>
    tpu.vector_store %arg3[%c0_3, %c0_4], %2 {strides = array<i32>} : memref<128x64xf32, #tpu.memory_space<vmem>>, vector<128x32xf32>,
    %c0_5 = arith.constant 0 : index
    %c32 = arith.constant 32 : index
    %4 = vector.load %arg3[%c0_5, %c32] : memref<128x64xf32, #tpu.memory_space<vmem>>, vector<128x32xf32>
    tpu.vector_store %arg3[%c0_5, %c32], %2 {strides = array<i32>} : memref<128x64xf32, #tpu.memory_space<vmem>>, vector<128x32xf32>,
    return
  }
  func.func @transform_0(%arg0: i32) -> (i32, i32) {
    %c0_i32 = arith.constant 0 : i32
    %c0_i32_0 = arith.constant 0 : i32
    return %arg0, %c0_i32 : i32, i32
  }
  func.func @transform_1(%arg0: i32) -> (i32, i32) {
    %c0_i32 = arith.constant 0 : i32
    %c0_i32_0 = arith.constant 0 : i32
    %c0_i32_1 = arith.constant 0 : i32
    return %c0_i32, %c0_i32_0 : i32, i32
  }
  func.func @transform_2(%arg0: i32) -> (i32, i32) {
    %c0_i32 = arith.constant 0 : i32
    %c0_i32_0 = arith.constant 0 : i32
    return %arg0, %c0_i32 : i32, i32
  }
}

</mosaic_0001>

<bundles_post_ra>
// kernel: tpu_custom_call.1
= control target key start
LH: loop header
LB: loop body
LE: loop exit
PB: predicated region body
PF: predicated region fallthrough
CT: control target
= control target key end

     0   :  { %vm29_vm0 = vcmask 130048   ;;  %vm1182_vm1 = vcmask 261120   ;;  %s1561_s17 = smov 32   ;;  %vm1263_vm2 = vcmask 523520   ;;  %s2189_s1 = inlined_call_operand.vmem [shape: f32[16,32], index: 1, kind: input, shape index: {}]   ;;  %s2190_s0 = inlined_call_operand.vmem [shape: f32[128,16], index: 0, kind: input, shape index: {}]   ;;  %s2191_s2 = inlined_call_operand.vmem [shape: f32[128,64], index: 2, kind: output, shape index: {}]  }
   0x1   :  { %v28_v0 = vld [vmem:[%s2189_s1 + $0x8] sm:$0xff]  ;;  %v27_v1 = vld [vmem:[%s2189_s1] sm:$0xff]  ;;  %v13_v7 = vld [vmem:[%s2190_s0 + $0x10] sm:$0xff] }
   0x2   :  { %v11_v2 = vld [vmem:[%s2190_s0] sm:$0xff]  ;;  %v1586_v3 = vand.u32 4294901760, %v28_v0  ;;  %v1588_v4 = vand.u32 4294901760, %v27_v1  ;;  %v12_v6 = vld [vmem:[%s2190_s0 + $0x8] sm:$0xff]  ;;  %v14_v8 = vld [vmem:[%s2190_s0 + $0x18] sm:$0xff]  ;;  %v37_v11 = vsel %vm29_vm0, %v13_v7, 0 }
   0x3   :  { %v31_v5 = vsel %vm29_vm0, %v11_v2, 0  ;;  %v34_v10 = vsel %vm29_vm0, %v12_v6, 0  ;;  %v40_v12 = vsel %vm29_vm0, %v14_v8, 0  ;;  %v15_v13 = vld [vmem:[%s2190_s0 + $0x20] sm:$0xff]  ;;  %v16_v14 = vld [vmem:[%s2190_s0 + $0x28] sm:$0xff]  ;;  %v1618_v18 = vand.u32 4294901760, %v37_v11 }
   0x4   :  { %v1600_v9 = vand.u32 4294901760, %v31_v5  ;;  %1392 = vmatprep.subr.mxu0 %v1586_v3  ;;  %v335_v15 = vsub.f32 %v28_v0, %v1586_v3  ;;  %v1613_v16 = vand.u32 4294901760, %v34_v10  ;;  %v1616_v17 = vsub.f32 %v27_v1, %v1588_v4  ;;  %v17_v39 = vld [vmem:[%s2190_s0 + $0x30] sm:$0xff]  ;;  %v18_v40 = vld [vmem:[%s2190_s0 + $0x38] sm:$0xff]  ;;  %v19_v49 = vld [vmem:[%s2190_s0 + $0x40] sm:$0xff] }
   0x5   :  { %1393 = vmatpush3.msra.mxu0 %v1586_v3  ;;  %v1625_v20 = vand.u32 4294901760, %v40_v12  ;;  %v43_v21 = vsel %vm29_vm0, %v15_v13, 0  ;;  %v46_v22 = vsel %vm29_vm0, %v16_v14, 0  ;;  %v1639_v26 = vsub.f32 %v37_v11, %v1618_v18  ;;  %v20_v50 = vld [vmem:[%s2190_s0 + $0x48] sm:$0xff]  ;;  %v21_v51 = vld [vmem:[%s2190_s0 + $0x50] sm:$0xff]  ;;  %v22_v60 = vld [vmem:[%s2190_s0 + $0x58] sm:$0xff] }
   0x6   :  { %v1622_v19 = vsub.f32 %v31_v5, %v1600_v9  ;;  %1424 = vmatprep.mubr.f32.mxu1 %v1600_v9  ;;  %1394 = vmatprep.subr.mxu0 %v1588_v4  ;;  %v1630_v23 = vand.u32 4294901760, %v335_v15  ;;  %v1633_v24 = vsub.f32 %v34_v10, %v1613_v16  ;;  %v1636_v25 = vand.u32 4294901760, %v1616_v17  ;;  %v23_v1 = vld [vmem:[%s2190_s0 + $0x60] sm:$0xff]  ;;  %v24_v13 = vld [vmem:[%s2190_s0 + $0x68] sm:$0xff] }
   0x7   :  { %1395 = vmatpush3.msra.mxu0 %v1588_v4  ;;  %v1644_v28 = vsub.f32 %v40_v12, %v1625_v20  ;;  %v1646_v29 = vand.u32 4294901760, %v43_v21  ;;  %v1648_v30 = vand.u32 4294901760, %v46_v22  ;;  %v167_v34 = vand.u32 4294901760, %v1639_v26 }
   0x8   :  { %v147_v27 = vand.u32 4294901760, %v1622_v19  ;;  %v337_v31 = vsub.f32 %v335_v15, %v1630_v23  ;;  %v157_v32 = vand.u32 4294901760, %v1633_v24  ;;  %v344_v33 = vsub.f32 %v1616_v17, %v1636_v25  ;;  %1448 = vmatprep.subr.mxu0 %v335_v15 }
   0x9   :  { %v177_v36 = vand.u32 4294901760, %v1644_v28  ;;  %v1660_v37 = vsub.f32 %v43_v21, %v1646_v29  ;;  %v1663_v38 = vsub.f32 %v46_v22, %v1648_v30  ;;  %v168_v44 = vsub.f32 %v1639_v26, %v167_v34 }
   0xa   :  { %v148_v35 = vsub.f32 %v1622_v19, %v147_v27  ;;  %v338_v41 = vand.u32 4294901760, %v337_v31  ;;  %v158_v42 = vsub.f32 %v1633_v24, %v157_v32  ;;  %v345_v43 = vand.u32 4294901760, %v344_v33 }
   0xb   :  { %v178_v46 = vsub.f32 %v1644_v28, %v177_v36  ;;  %v187_v47 = vand.u32 4294901760, %v1660_v37  ;;  %v197_v48 = vand.u32 4294901760, %v1663_v38  ;;  %v169_v53 = vand.u32 4294901760, %v168_v44 }
   0xc   :  { %v149_v45 = vand.u32 4294901760, %v148_v35  ;;  %1420 = vmatprep.subr.mxu1 %v338_v41  ;;  %v159_v52 = vand.u32 4294901760, %v158_v42  ;;  %v49_v54 = vsel %vm29_vm0, %v17_v39, 0  ;;  %v52_v55 = vsel %vm29_vm0, %v18_v40, 0 }
   0xd   :  { %1421 = vmatpush3.msra.mxu1 %v338_v41  ;;  %v179_v56 = vand.u32 4294901760, %v178_v46  ;;  %v188_v57 = vsub.f32 %v1660_v37, %v187_v47  ;;  %v198_v58 = vsub.f32 %v1663_v38, %v197_v48  ;;  %v1699_v59 = vand.u32 4294901760, %v49_v54 }
   0xe   :  { %1396 = vmatprep.mubr.f32.mxu0 %v149_v45  ;;  %1422 = vmatprep.subr.mxu1 %v345_v43  ;;  %v1704_v61 = vand.u32 4294901760, %v52_v55  ;;  %v55_v62 = vsel %vm29_vm0, %v19_v49, 0  ;;  %v58_v63 = vsel %vm29_vm0, %v20_v50, 0  ;;  %v61_v0 = vsel %vm29_vm0, %v21_v51, 0  ;;  %v25_v50 = vld [vmem:[%s2190_s0 + $0x70] sm:$0xff] }
   0xf   :  { %1397 = vmatmul.mubr.f32.vlgmr.msra.gmra.mxu0 %v159_v52  ;;  %1423 = vmatpush3.msra.mxu1 %v345_v43  ;;  %v189_v2 = vand.u32 4294901760, %v188_v57  ;;  %v199_v5 = vand.u32 4294901760, %v198_v58  ;;  %v1713_v6 = vsub.f32 %v49_v54, %v1699_v59  ;;  %v1715_v7 = vand.u32 4294901760, %v55_v62  ;;  %v26_v57 = vld [vmem:[%s2190_s0 + $0x78] sm:$0xff] }
  0x10   :  { %1449 = vmatpush3.msra.mxu0 %v335_v15  ;;  %1425 = vmatmul.mubr.f32.vlgmr.msra.gmra.mxu1 %v1613_v16  ;;  %v1720_v8 = vsub.f32 %v52_v55, %v1704_v61  ;;  %v1722_v10 = vand.u32 4294901760, %v58_v63  ;;  %v1724_v11 = vand.u32 4294901760, %v61_v0  ;;  %v64_v12 = vsel %vm29_vm0, %v22_v60, 0 }
  0x11   :  { %1476 = vmatprep.subr.mxu1 %v1586_v3  ;;  %1399 = vmatprep.mubr.f32.mxu0 %v169_v53  ;;  %v207_v14 = vand.u32 4294901760, %v1713_v6  ;;  %v1733_v15 = vsub.f32 %v55_v62, %v1715_v7  ;;  %v1735_v21 = vand.u32 4294901760, %v64_v12  ;;  %v67_v22 = vsel %vm29_vm0, %v23_v1, 0 }
  0x12   :  { %1477 = vmatpush3.msra.mxu1 %v1586_v3  ;;  %1427 = vmatprep.mubr.f32.mxu1 %v1618_v18  ;;  %v217_v31 = vand.u32 4294901760, %v1720_v8  ;;  %v1741_v33 = vsub.f32 %v58_v63, %v1722_v10  ;;  %v1744_v35 = vsub.f32 %v61_v0, %v1724_v11  ;;  %v1746_v39 = vand.u32 4294901760, %v67_v22 }
  0x13   :  { %1400 = vmatmul.mubr.f32.gmra.mxu0 %v179_v56  ;;  %v208_v40 = vsub.f32 %v1713_v6, %v207_v14  ;;  %v227_v41 = vand.u32 4294901760, %v1733_v15  ;;  %1450 = vmatprep.subr.mxu0 %v1616_v17  ;;  %v1754_v42 = vsub.f32 %v64_v12, %v1735_v21  ;;  %v70_v43 = vsel %vm29_vm0, %v24_v13, 0 }
  0x14   :  { %1402 = vmatprep.mubr.f32.mxu0 %v189_v2  ;;  %1428 = vmatmul.mubr.f32.gmra.mxu1 %v1625_v20  ;;  %v218_v44 = vsub.f32 %v1720_v8, %v217_v31  ;;  %v237_v45 = vand.u32 4294901760, %v1741_v33  ;;  %v247_v46 = vand.u32 4294901760, %v1744_v35  ;;  %v1765_v49 = vsub.f32 %v67_v22, %v1746_v39 }
  0x15   :  { %1451 = vmatpush3.msra.mxu0 %v1616_v17  ;;  %1430 = vmatprep.mubr.f32.mxu1 %v1646_v29  ;;  %v209_v51 = vand.u32 4294901760, %v208_v40  ;;  %v228_v52 = vsub.f32 %v1733_v15, %v227_v41  ;;  %v257_v17 = vand.u32 4294901760, %v1754_v42  ;;  %v1776_v53 = vand.u32 4294901760, %v70_v43 }
  0x16   :  { %1478 = vmatprep.subr.mxu1 %v1588_v4  ;;  %v219_v54 = vand.u32 4294901760, %v218_v44  ;;  %v238_v55 = vsub.f32 %v1741_v33, %v237_v45  ;;  %v248_v56 = vsub.f32 %v1744_v35, %v247_v46  ;;  %v267_v60 = vand.u32 4294901760, %v1765_v49  ;;  %1504 = vmatprep.subr.mxu0 %v1630_v23 }
  0x17   :  { %1403 = vmatmul.mubr.f32.gmra.mxu0 %v199_v5  ;;  %1479 = vmatpush3.msra.mxu1 %v1588_v4  ;;  %v229_v58 = vand.u32 4294901760, %v228_v52  ;;  %v1790_v62 = vsub.f32 %v70_v43, %v1776_v53  ;;  %v73_v63 = vsel %vm29_vm0, %v25_v50, 0  ;;  %v258_v1 = vsub.f32 %v1754_v42, %v257_v17 }
  0x18   :  { %1405 = vmatprep.mubr.f32.mxu0 %v209_v51  ;;  %1431 = vmatmul.mubr.f32.gmra.mxu1 %v1648_v30  ;;  %v1795_v0 = vand.u32 4294901760, %v73_v63  ;;  %v76_v2 = vsel %vm29_vm0, %v26_v57, 0  ;;  %v239_v5 = vand.u32 4294901760, %v238_v55  ;;  %v249_v40 = vand.u32 4294901760, %v248_v56 }
  0x19   :  { %1532 = vmatprep.subr.mxu1 %v1586_v3  ;;  %1433 = vmatprep.mubr.f32.mxu1 %v1699_v59  ;;  %v277_v12 = vand.u32 4294901760, %v1790_v62  ;;  %v1807_v22 = vand.u32 4294901760, %v76_v2  ;;  %v268_v43 = vsub.f32 %v1765_v49, %v267_v60  ;;  %v259_v51 = vand.u32 4294901760, %v258_v1 }
  0x1a   :  { %v1805_v13 = vsub.f32 %v73_v63, %v1795_v0 }
  0x1b   :  { %1406 = vmatmul.mubr.f32.gmra.mxu0 %v219_v54  ;;  %v1815_v50 = vsub.f32 %v76_v2, %v1807_v22  ;;  %v278_v52 = vsub.f32 %v1790_v62, %v277_v12  ;;  %v269_v55 = vand.u32 4294901760, %v268_v43 }
  0x1c   :  { %1408 = vmatprep.mubr.f32.mxu0 %v229_v58  ;;  %1434 = vmatmul.mubr.f32.gmra.mxu1 %v1704_v61  ;;  %v287_v44 = vand.u32 4294901760, %v1805_v13 }
  0x1d   :  { %1436 = vmatprep.mubr.f32.mxu1 %v1715_v7  ;;  %v297_v54 = vand.u32 4294901760, %v1815_v50  ;;  %v279_v57 = vand.u32 4294901760, %v278_v52 }
  0x1e   :  { %v288_v56 = vsub.f32 %v1805_v13, %v287_v44 }
  0x1f   :  { %1409 = vmatmul.mubr.f32.gmra.mxu0 %v239_v5  ;;  %v298_v58 = vsub.f32 %v1815_v50, %v297_v54 }
  0x20   :  { %1411 = vmatprep.mubr.f32.mxu0 %v249_v40  ;;  %1437 = vmatmul.mubr.f32.gmra.mxu1 %v1722_v10  ;;  %v289_v63 = vand.u32 4294901760, %v288_v56 }
  0x21   :  { %1439 = vmatprep.mubr.f32.mxu1 %v1724_v11  ;;  %v299_v1 = vand.u32 4294901760, %v298_v58 }
  0x23   :  { %1412 = vmatmul.mubr.f32.gmra.mxu0 %v259_v51 }
  0x24   :  { %1414 = vmatprep.mubr.f32.mxu0 %v269_v55  ;;  %1440 = vmatmul.mubr.f32.gmra.mxu1 %v1735_v21 }
  0x25   :  { %1442 = vmatprep.mubr.f32.mxu1 %v1746_v39 }
  0x27   :  { %1415 = vmatmul.mubr.f32.gmra.mxu0 %v279_v57 }
  0x28   :  { %1417 = vmatprep.mubr.f32.mxu0 %v289_v63  ;;  %1443 = vmatmul.mubr.f32.gmra.mxu1 %v1776_v53 }
  0x29   :  { %1445 = vmatprep.mubr.f32.mxu1 %v1795_v0 }
  0x2b   :  { %1418 = vmatmul.mubr.f32.gmra.mxu0 %v299_v1 }
  0x2c   :  { %1452 = vmatprep.mubr.f32.mxu0 %v1622_v19  ;;  %1446 = vmatmul.mubr.f32.gmra.mxu1 %v1807_v22 }
  0x2d   :  { %1480 = vmatprep.mubr.f32.mxu1 %v147_v27 }
  0x2f   :  { %1453 = vmatmul.mubr.f32.vlgmr.msra.gmra.mxu0 %v1633_v24 }
  0x30   :  { %1505 = vmatpush3.msra.mxu0 %v1630_v23  ;;  %1455 = vmatprep.mubr.f32.mxu0 %v1639_v26 }
  0x31   :  { %1481 = vmatmul.mubr.f32.vlgmr.msra.gmra.mxu1 %v157_v32  ;;  %1506 = vmatprep.subr.mxu0 %v1636_v25 }
  0x32   :  { %1533 = vmatpush3.msra.mxu1 %v1586_v3  ;;  %1483 = vmatprep.mubr.f32.mxu1 %v167_v34 }
  0x33   :  { %1456 = vmatmul.mubr.f32.gmra.mxu0 %v1644_v28  ;;  %1534 = vmatprep.subr.mxu1 %v1588_v4 }
  0x34   :  { %1458 = vmatprep.mubr.f32.mxu0 %v1660_v37  ;;  %1507 = vmatpush3.msra.mxu0 %v1636_v25 }
  0x35   :  { %1484 = vmatmul.mubr.f32.gmra.mxu1 %v177_v36 }
  0x36   :  { %1486 = vmatprep.mubr.f32.mxu1 %v187_v47  ;;  %1535 = vmatpush3.msra.mxu1 %v1588_v4 }
  0x37   :  { %1459 = vmatmul.mubr.f32.gmra.mxu0 %v1663_v38 }
  0x38   :  { %1461 = vmatprep.mubr.f32.mxu0 %v1713_v6 }
  0x39   :  { %1487 = vmatmul.mubr.f32.gmra.mxu1 %v197_v48 }
  0x3a   :  { %1489 = vmatprep.mubr.f32.mxu1 %v207_v14 }
  0x3b   :  { %1462 = vmatmul.mubr.f32.gmra.mxu0 %v1720_v8 }
  0x3c   :  { %1464 = vmatprep.mubr.f32.mxu0 %v1733_v15 }
  0x3d   :  { %1490 = vmatmul.mubr.f32.gmra.mxu1 %v217_v31 }
  0x3e   :  { %1492 = vmatprep.mubr.f32.mxu1 %v227_v41 }
  0x3f   :  { %1465 = vmatmul.mubr.f32.gmra.mxu0 %v1741_v33 }
  0x40   :  { %1467 = vmatprep.mubr.f32.mxu0 %v1744_v35 }
  0x41   :  { %1493 = vmatmul.mubr.f32.gmra.mxu1 %v237_v45 }
  0x42   :  { %1495 = vmatprep.mubr.f32.mxu1 %v247_v46 }
  0x43   :  { %1468 = vmatmul.mubr.f32.gmra.mxu0 %v1754_v42 }
  0x44   :  { %1470 = vmatprep.mubr.f32.mxu0 %v1765_v49 }
  0x45   :  { %1496 = vmatmul.mubr.f32.gmra.mxu1 %v257_v17 }
  0x46   :  { %1498 = vmatprep.mubr.f32.mxu1 %v267_v60 }
  0x47   :  { %1471 = vmatmul.mubr.f32.gmra.mxu0 %v1790_v62 }
  0x48   :  { %1473 = vmatprep.mubr.f32.mxu0 %v1805_v13 }
  0x49   :  { %1499 = vmatmul.mubr.f32.gmra.mxu1 %v277_v12 }
  0x4a   :  { %1501 = vmatprep.mubr.f32.mxu1 %v287_v44 }
  0x4b   :  { %1474 = vmatmul.mubr.f32.gmra.mxu0 %v1815_v50 }
  0x4c   :  { %1508 = vmatprep.mubr.f32.mxu0 %v1600_v9 }
  0x4d   :  { %1502 = vmatmul.mubr.f32.gmra.mxu1 %v297_v54 }
  0x4e   :  { %1536 = vmatprep.mubr.f32.mxu1 %v1600_v9 }
  0x4f   :  { %1509 = vmatmul.mubr.f32.vlgmr.msra.gmra.mxu0 %v1613_v16 }
  0x50   :  { %1511 = vmatprep.mubr.f32.mxu0 %v1618_v18 }
  0x51   :  { %1537 = vmatmul.mubr.f32.vlgmr.msra.gmra.mxu1 %v1613_v16 }
  0x52   :  { %1539 = vmatprep.mubr.f32.mxu1 %v1618_v18 }
  0x53   :  { %1512 = vmatmul.mubr.f32.gmra.mxu0 %v1625_v20 }
  0x54   :  { %1514 = vmatprep.mubr.f32.mxu0 %v1646_v29 }
  0x55   :  { %1540 = vmatmul.mubr.f32.gmra.mxu1 %v1625_v20 }
  0x56   :  { %1542 = vmatprep.mubr.f32.mxu1 %v1646_v29 }
  0x57   :  { %1515 = vmatmul.mubr.f32.gmra.mxu0 %v1648_v30 }
  0x58   :  { %1517 = vmatprep.mubr.f32.mxu0 %v1699_v59 }
  0x59   :  { %1543 = vmatmul.mubr.f32.gmra.mxu1 %v1648_v30 }
  0x5a   :  { %1545 = vmatprep.mubr.f32.mxu1 %v1699_v59 }
  0x5b   :  { %1518 = vmatmul.mubr.f32.gmra.mxu0 %v1704_v61 }
  0x5c   :  { %1520 = vmatprep.mubr.f32.mxu0 %v1715_v7 }
  0x5d   :  { %1546 = vmatmul.mubr.f32.gmra.mxu1 %v1704_v61 }
  0x5e   :  { %1548 = vmatprep.mubr.f32.mxu1 %v1715_v7 }
  0x5f   :  { %1521 = vmatmul.mubr.f32.gmra.mxu0 %v1722_v10 }
  0x60   :  { %1523 = vmatprep.mubr.f32.mxu0 %v1724_v11 }
  0x61   :  { %1549 = vmatmul.mubr.f32.gmra.mxu1 %v1722_v10 }
  0x62   :  { %1551 = vmatprep.mubr.f32.mxu1 %v1724_v11 }
  0x63   :  { %1524 = vmatmul.mubr.f32.gmra.mxu0 %v1735_v21 }
  0x64   :  { %1526 = vmatprep.mubr.f32.mxu0 %v1746_v39 }
  0x65   :  { %1552 = vmatmul.mubr.f32.gmra.mxu1 %v1735_v21 }
  0x66   :  { %1554 = vmatprep.mubr.f32.mxu1 %v1746_v39 }
  0x67   :  { %1527 = vmatmul.mubr.f32.gmra.mxu0 %v1776_v53 }
  0x68   :  { %1529 = vmatprep.mubr.f32.mxu0 %v1795_v0 }
  0x69   :  { %1555 = vmatmul.mubr.f32.gmra.mxu1 %v1776_v53 }
  0x6a   :  { %1557 = vmatprep.mubr.f32.mxu1 %v1795_v0 }
  0x6b   :  { %1530 = vmatmul.mubr.f32.gmra.mxu0 %v1807_v22 }
  0x6d   :  { %1558 = vmatmul.mubr.f32.gmra.mxu1 %v1807_v22 }
  0xcf   :  { %v1398_v3 = vpop.f32.mrf.mxu0 }
  0xd0   :  { %v1426_v9 = vpop.f32.mrf.mxu1 }
  0xd1   :  { %v151_v4 = vpop.f32.mrf.mxu0  ;;  %v389_v54 = vadd.f32 %v1426_v9, %v1398_v3 }
  0xd2   :  { %v382_v18 = vpop.f32.mrf.mxu1 }
  0xd3   :  { %v1401_v16 = vpop.f32.mrf.mxu0  ;;  %v383_v57 = vadd.f32 %v382_v18, %v151_v4 }
  0xd4   :  { %v1429_v20 = vpop.f32.mrf.mxu1 }
  0xd5   :  { %v1913_v19 = vpop.f32.mrf.mxu0 }
  0xd6   :  { %v394_v24 = vpop.f32.mrf.mxu1 }
  0xd7   :  { %v1915_v23 = vpop.f32.mrf.mxu0 }
  0xd8   :  { %v1919_v26 = vpop.f32.mrf.mxu1 }
  0xd9   :  { %v1917_v25 = vpop.f32.mrf.mxu0  ;;  %v413_v4 = vadd.f32 %v1919_v26, %v1915_v23 }
  0xda   :  { %v1923_v28 = vpop.f32.mrf.mxu1 }
  0xdb   :  { %v1921_v27 = vpop.f32.mrf.mxu0 }
  0xdc   :  { %v1927_v30 = vpop.f32.mrf.mxu1 }
  0xdd   :  { %v1925_v29 = vpop.f32.mrf.mxu0 }
  0xde   :  { %v1931_v34 = vpop.f32.mrf.mxu1 }
  0xdf   :  { %v1929_v32 = vpop.f32.mrf.mxu0 }
  0xe0   :  { %v1935_v37 = vpop.f32.mrf.mxu1 }
  0xe1   :  { %v1933_v36 = vpop.f32.mrf.mxu0 }
  0xe2   :  { %v1939_v47 = vpop.f32.mrf.mxu1 }
  0xe3   :  { %v1937_v38 = vpop.f32.mrf.mxu0 }
  0xe4   :  { %v1943_v59 = vpop.f32.mrf.mxu1 }
  0xe5   :  { %v1941_v48 = vpop.f32.mrf.mxu0 }
  0xe6   :  { %v1947_v6 = vpop.f32.mrf.mxu1 }
  0xe7   :  { %v1945_v61 = vpop.f32.mrf.mxu0 }
  0xe8   :  { %v1951_v8 = vpop.f32.mrf.mxu1 }
  0xe9   :  { %v1949_v7 = vpop.f32.mrf.mxu0 }
  0xea   :  { %v1955_v11 = vpop.f32.mrf.mxu1 }
  0xeb   :  { %v1953_v10 = vpop.f32.mrf.mxu0 }
  0xec   :  { %2192 = vst [vmem:[#allocation2_spill] sm:$0xff] %v1953_v10  ;;  %v1959_v15 = vpop.f32.mrf.mxu1 }
  0xed   :  { %v1957_v14 = vpop.f32.mrf.mxu0  ;;  %2194 = vst [vmem:[#allocation4_spill] sm:$0xff] %v1959_v15 }
  0xee   :  { %2193 = vst [vmem:[#allocation3_spill] sm:$0xff] %v1957_v14  ;;  %v1961_v21 = vpop.f32.mrf.mxu1 }
  0xef   :  { %2195 = vst [vmem:[#allocation5_spill] sm:$0xff] %v1961_v21  ;;  %v1454_v31 = vpop.f32.mrf.mxu0  ;;  %v401_v21 = vadd.f32 %v1429_v20, %v1401_v16  ;;  %v407_v16 = vadd.f32 %v1923_v28, %v1917_v25  ;;  %v419_v28 = vadd.f32 %v1931_v34, %v1925_v29 }
  0xf0   :  { %v556_v58 = vadd.f32 %v1454_v31, %v389_v54 }
  0xf1   :  { %v548_v33 = vpop.f32.mrf.mxu0  ;;  %v1482_v35 = vpop.f32.mrf.mxu1 }
  0xf2   :  { %v549_v14 = vadd.f32 %v548_v33, %v383_v57 }
  0xf3   :  { %v1457_v39 = vpop.f32.mrf.mxu0  ;;  %v728_v41 = vpop.f32.mrf.mxu1 }
  0xf4   :  { %v570_v3 = vadd.f32 %v1457_v39, %v401_v21  ;;  %v729_v18 = vadd.f32 %v728_v41, %v549_v14 }
  0xf5   :  { %v562_v42 = vpop.f32.mrf.mxu0  ;;  %v1485_v45 = vpop.f32.mrf.mxu1 }
  0xf6   :  { %v753_v57 = vadd.f32 %v1485_v45, %v570_v3 }
  0xf7   :  { %v1460_v46 = vpop.f32.mrf.mxu0  ;;  %v744_v49 = vpop.f32.mrf.mxu1 }
  0xf9   :  { %v576_v17 = vpop.f32.mrf.mxu0  ;;  %v1488_v53 = vpop.f32.mrf.mxu1 }
  0xfa   :  { %v577_v21 = vadd.f32 %v576_v17, %v407_v16  ;;  %v461_v16 = vadd.f32 %v1951_v8, %v1945_v61 }
  0xfb   :  { %v1463_v60 = vpop.f32.mrf.mxu0  ;;  %v760_v62 = vpop.f32.mrf.mxu1 }
  0xfd   :  { %v1963_v0 = vpop.f32.mrf.mxu0  ;;  %v1965_v2 = vpop.f32.mrf.mxu1 }
  0xff   :  { %v1967_v5 = vpop.f32.mrf.mxu0  ;;  %v1969_v12 = vpop.f32.mrf.mxu1 }
 0x101   :  { %v1971_v13 = vpop.f32.mrf.mxu0  ;;  %v1973_v22 = vpop.f32.mrf.mxu1 }
 0x103   :  { %v1975_v40 = vpop.f32.mrf.mxu0  ;;  %v1977_v43 = vpop.f32.mrf.mxu1 }
 0x105   :  { %v1979_v44 = vpop.f32.mrf.mxu0  ;;  %v1981_v50 = vpop.f32.mrf.mxu1 }
 0x107   :  { %v1983_v51 = vpop.f32.mrf.mxu0  ;;  %v1985_v52 = vpop.f32.mrf.mxu1 }
 0x108   :  { %2196 = vst [vmem:[#allocation6_spill] sm:$0xff] %v1983_v51  ;;  %2197 = vst [vmem:[#allocation7_spill] sm:$0xff] %v1985_v52  ;;  %v395_v51 = vadd.f32 %v394_v24, %v1913_v19  ;;  %v737_v52 = vadd.f32 %v1482_v35, %v556_v58  ;;  %v425_v58 = vadd.f32 %v1927_v30, %v1921_v27 }
 0x109   :  { %v1987_v55 = vpop.f32.mrf.mxu0  ;;  %v1989_v56 = vpop.f32.mrf.mxu1 }
 0x10a   :  { %2198 = vst [vmem:[#allocation8_spill] sm:$0xff] %v1987_v55  ;;  %v563_v31 = vadd.f32 %v562_v42, %v395_v51  ;;  %v598_v45 = vadd.f32 %v1463_v60, %v425_v58 }
 0x10b   :  { %v1991_v63 = vpop.f32.mrf.mxu0  ;;  %v1993_v1 = vpop.f32.mrf.mxu1 }
 0x10c   :  { %v745_v23 = vadd.f32 %v744_v49, %v563_v31  ;;  %v761_v49 = vadd.f32 %v760_v62, %v577_v21 }
 0x10d   :  { %v1995_v15 = vpop.f32.mrf.mxu0  ;;  %v1997_v10 = vpop.f32.mrf.mxu1 }
 0x10e   :  { %2199 = vst [vmem:[#allocation9_spill] sm:$0xff] %v1997_v10  ;;  %v584_v10 = vadd.f32 %v1460_v46, %v413_v4  ;;  %v437_v46 = vadd.f32 %v1935_v37, %v1929_v32 }
 0x10f   :  { %v2000_v9 = vpop.f32.mrf.mxu1  ;;  %v1510_v55 = vpop.f32.mrf.mxu0 }
 0x110   :  { %v932_v54 = vadd.f32 %v1510_v55, %v737_v52  ;;  %v769_v42 = vadd.f32 %v1488_v53, %v584_v10  ;;  %v591_v52 = vadd.f32 %v1963_v0, %v419_v28  ;;  %v431_v10 = vadd.f32 %v1939_v47, %v1933_v36 }
 0x111   :  { %v925_v20 = vpop.f32.mrf.mxu0  ;;  %v1538_v33 = vpop.f32.mrf.mxu1  ;;  %v785_v53 = vadd.f32 %v1965_v2, %v598_v45  ;;  %v612_v60 = vadd.f32 %v1967_v5, %v437_v46  ;;  %v449_v55 = vadd.f32 %v1943_v59, %v1937_v38 }
 0x112   :  { %v926_v19 = vadd.f32 %v925_v20, %v729_v18  ;;  %v1095_v24 = vadd.f32 %v1538_v33, %v932_v54  ;;  %v777_v36 = vadd.f32 %v1969_v12, %v591_v52  ;;  %v605_v47 = vadd.f32 %v1971_v13, %v431_v10 }
 0x113   :  { %v1513_v35 = vpop.f32.mrf.mxu0  ;;  %v1088_v39 = vpop.f32.mrf.mxu1  ;;  %v443_v18 = vadd.f32 %v1947_v6, %v1941_v48  ;;  %v801_v59 = vadd.f32 %v1973_v22, %v612_v60  ;;  %v626_v12 = vadd.f32 %v1975_v40, %v449_v55 }
 0x114   :  { %1184 = vst.msk [vmem:[%s2191_s2 + $0x8] sm:$0xff] %vm1182_vm1, %v1095_v24  ;;  %v944_v25 = vadd.f32 %v1513_v35, %v753_v57  ;;  %v1089_v26 = vadd.f32 %v1088_v39, %v926_v19  ;;  %1217 = vrot.lane.b32.xlu0 %v1095_v24, %s1561_s17  ;;  %v793_v6 = vadd.f32 %v1977_v43, %v605_v47  ;;  %v2200_v24 = vld [vmem:[#allocation6_spill] sm:$0xff]  ;;  %v2202_v39 = vld [vmem:[#allocation4_spill] sm:$0xff] }
 0x115   :  { %v937_v14 = vpop.f32.mrf.mxu0  ;;  %v1541_v41 = vpop.f32.mrf.mxu1  ;;  %v619_v22 = vadd.f32 %v1979_v44, %v443_v18  ;;  %v455_v57 = vadd.f32 %v1955_v11, %v1949_v7  ;;  %v817_v8 = vadd.f32 %v1981_v50, %v626_v12  ;;  %v640_v43 = vadd.f32 %v2200_v24, %v461_v16  ;;  %v2201_v35 = vld [vmem:[#allocation2_spill] sm:$0xff]  ;;  %v2203_v11 = vld [vmem:[#allocation7_spill] sm:$0xff] }
 0x116   :  { %1183 = vst.msk [vmem:[%s2191_s2] sm:$0xff] %vm1182_vm1, %v1089_v26  ;;  %v938_v27 = vadd.f32 %v937_v14, %v745_v23  ;;  %v1107_v30 = vadd.f32 %v1541_v41, %v944_v25  ;;  %v473_v58 = vadd.f32 %v2202_v39, %v2201_v35  ;;  %v2205_v41 = vld [vmem:[#allocation3_spill] sm:$0xff] }
 0x117   :  { %v1516_v17 = vpop.f32.mrf.mxu0  ;;  %v1100_v51 = vpop.f32.mrf.mxu1  ;;  %v809_v25 = vadd.f32 %v2203_v11, %v619_v22  ;;  %v833_v46 = vadd.f32 %v1989_v56, %v640_v43 }
 0x118   :  { %1186 = vst.msk [vmem:[%s2191_s2 + $0x18] sm:$0xff] %vm1182_vm1, %v1107_v30  ;;  %v956_v29 = vadd.f32 %v1516_v17, %v769_v42  ;;  %v1101_v34 = vadd.f32 %v1100_v51, %v938_v27  ;;  %1221 = vrot.lane.b32.xlu1 %v1107_v30, %s1561_s17  ;;  %1215 = vrot.lane.b32.xlu0 %v1089_v26, %s1561_s17  ;;  %v2204_v26 = vld [vmem:[#allocation8_spill] sm:$0xff]  ;;  %v2206_v42 = vld [vmem:[#allocation5_spill] sm:$0xff] }
 0x119   :  { %v949_v32 = vpop.f32.mrf.mxu0  ;;  %v1544_v37 = vpop.f32.mrf.mxu1  ;;  %v633_v50 = vadd.f32 %v2204_v26, %v455_v57  ;;  %v467_v45 = vadd.f32 %v2206_v42, %v2205_v41 }
 0x11a   :  { %1185 = vst.msk [vmem:[%s2191_s2 + $0x10] sm:$0xff] %vm1182_vm1, %v1101_v34  ;;  %v950_v62 = vadd.f32 %v949_v32, %v761_v49  ;;  %v1119_v0 = vadd.f32 %v1544_v37, %v956_v29  ;;  %v654_v49 = vadd.f32 %v1991_v63, %v473_v58 }
 0x11b   :  { %v1519_v3 = vpop.f32.mrf.mxu0  ;;  %v1112_v4 = vpop.f32.mrf.mxu1  ;;  %v647_v10 = vadd.f32 %v1995_v15, %v467_v45 }
 0x11c   :  { %1188 = vst.msk [vmem:[%s2191_s2 + $0x28] sm:$0xff] %vm1182_vm1, %v1119_v0  ;;  %v968_v2 = vadd.f32 %v1519_v3, %v785_v53  ;;  %v1113_v5 = vadd.f32 %v1112_v4, %v950_v62  ;;  %1219 = vrot.lane.b32.xlu1 %v1101_v34, %s1561_s17  ;;  %v825_v34 = vadd.f32 %v1993_v1, %v633_v50  ;;  %v2207_v53 = vld [vmem:[#allocation9_spill] sm:$0xff] }
 0x11d   :  { %v961_v31 = vpop.f32.mrf.mxu0  ;;  %v1547_v38 = vpop.f32.mrf.mxu1  ;;  %v849_v60 = vadd.f32 %v2207_v53, %v654_v49  ;;  %v841_v55 = vadd.f32 %v2000_v9, %v647_v10 }
 0x11e   :  { %1187 = vst.msk [vmem:[%s2191_s2 + $0x20] sm:$0xff] %vm1182_vm1, %v1113_v5  ;;  %v962_v13 = vadd.f32 %v961_v31, %v777_v36  ;;  %v1131_v54 = vadd.f32 %v1547_v38, %v968_v2  ;;  %1223 = vrot.lane.b32.xlu0 %v1113_v5, %s1561_s17 }
 0x11f   :  { %v1522_v20 = vpop.f32.mrf.mxu0  ;;  %v1124_v48 = vpop.f32.mrf.mxu1 }
 0x120   :  { %1190 = vst.msk [vmem:[%s2191_s2 + $0x38] sm:$0xff] %vm1182_vm1, %v1131_v54  ;;  %v980_v40 = vadd.f32 %v1522_v20, %v801_v59  ;;  %v1125_v33 = vadd.f32 %v1124_v48, %v962_v13  ;;  %1225 = vrot.lane.b32.xlu1 %v1119_v0, %s1561_s17 }
 0x121   :  { %v973_v19 = vpop.f32.mrf.mxu0  ;;  %v1550_v61 = vpop.f32.mrf.mxu1 }
 0x122   :  { %1189 = vst.msk [vmem:[%s2191_s2 + $0x30] sm:$0xff] %vm1182_vm1, %v1125_v33  ;;  %v974_v44 = vadd.f32 %v973_v19, %v793_v6  ;;  %v1143_v21 = vadd.f32 %v1550_v61, %v980_v40  ;;  %1227 = vrot.lane.b32.xlu0 %v1125_v33, %s1561_s17 }
 0x123   :  { %v1525_v23 = vpop.f32.mrf.mxu0  ;;  %v1136_v7 = vpop.f32.mrf.mxu1 }
 0x124   :  { %1192 = vst.msk [vmem:[%s2191_s2 + $0x48] sm:$0xff] %vm1182_vm1, %v1143_v21  ;;  %v992_v28 = vadd.f32 %v1525_v23, %v817_v8  ;;  %v1137_v14 = vadd.f32 %v1136_v7, %v974_v44  ;;  %1229 = vrot.lane.b32.xlu1 %v1131_v54, %s1561_s17 }
 0x125   :  { %v985_v27 = vpop.f32.mrf.mxu0  ;;  %v1553_v30 = vpop.f32.mrf.mxu1 }
 0x126   :  { %1191 = vst.msk [vmem:[%s2191_s2 + $0x40] sm:$0xff] %vm1182_vm1, %v1137_v14  ;;  %v986_v17 = vadd.f32 %v985_v27, %v809_v25  ;;  %v1155_v51 = vadd.f32 %v1553_v30, %v992_v28  ;;  %1231 = vrot.lane.b32.xlu0 %v1137_v14, %s1561_s17 }
 0x127   :  { %v1528_v52 = vpop.f32.mrf.mxu0  ;;  %v1148_v29 = vpop.f32.mrf.mxu1 }
 0x128   :  { %1194 = vst.msk [vmem:[%s2191_s2 + $0x58] sm:$0xff] %vm1182_vm1, %v1155_v51  ;;  %v1004_v56 = vadd.f32 %v1528_v52, %v833_v46  ;;  %v1149_v63 = vadd.f32 %v1148_v29, %v986_v17  ;;  %1233 = vrot.lane.b32.xlu1 %v1143_v21, %s1561_s17 }
 0x129   :  { %v997_v32 = vpop.f32.mrf.mxu0  ;;  %v1556_v37 = vpop.f32.mrf.mxu1 }
 0x12a   :  { %1193 = vst.msk [vmem:[%s2191_s2 + $0x50] sm:$0xff] %vm1182_vm1, %v1149_v63  ;;  %v998_v1 = vadd.f32 %v997_v32, %v825_v34  ;;  %v1167_v15 = vadd.f32 %v1556_v37, %v1004_v56  ;;  %1235 = vrot.lane.b32.xlu0 %v1149_v63, %s1561_s17 }
 0x12b   :  { %v1531_v62 = vpop.f32.mrf.mxu0  ;;  %v1160_v0 = vpop.f32.mrf.mxu1 }
 0x12c   :  { %1196 = vst.msk [vmem:[%s2191_s2 + $0x68] sm:$0xff] %vm1182_vm1, %v1167_v15  ;;  %v1016_v3 = vadd.f32 %v1531_v62, %v849_v60  ;;  %v1161_v4 = vadd.f32 %v1160_v0, %v998_v1  ;;  %1237 = vrot.lane.b32.xlu1 %v1155_v51, %s1561_s17 }
 0x12d   :  { %v1009_v36 = vpop.f32.mrf.mxu0  ;;  %v1559_v47 = vpop.f32.mrf.mxu1 }
 0x12e   :  { %1195 = vst.msk [vmem:[%s2191_s2 + $0x60] sm:$0xff] %vm1182_vm1, %v1161_v4  ;;  %v1010_v2 = vadd.f32 %v1009_v36, %v841_v55  ;;  %v1179_v5 = vadd.f32 %v1559_v47, %v1016_v3  ;;  %1239 = vrot.lane.b32.xlu0 %v1161_v4, %s1561_s17 }
 0x12f   :  { %v1172_v9 = vpop.f32.mrf.mxu1 }
 0x130   :  { %1198 = vst.msk [vmem:[%s2191_s2 + $0x78] sm:$0xff] %vm1182_vm1, %v1179_v5  ;;  %v1173_v18 = vadd.f32 %v1172_v9, %v1010_v2  ;;  %1241 = vrot.lane.b32.xlu1 %v1167_v15, %s1561_s17 }
 0x132   :  { %1197 = vst.msk [vmem:[%s2191_s2 + $0x70] sm:$0xff] %vm1182_vm1, %v1173_v18  ;;  %1243 = vrot.lane.b32.xlu0 %v1173_v18, %s1561_s17 }
 0x134   :  { %1245 = vrot.lane.b32.xlu1 %v1179_v5, %s1561_s17 }
 0x186   :  { %v1218_v31 = vpop.permute.xlu0 %1217 }
 0x187   :  { %1265 = vst.msk [vmem:[%s2191_s2 + $0x8] sm:$0xff] %vm1263_vm2, %v1218_v31 }
 0x18a   :  { %v1222_v38 = vpop.permute.xlu1 %1221  ;;  %v1216_v59 = vpop.permute.xlu0 %1215 }
 0x18b   :  { %1267 = vst.msk [vmem:[%s2191_s2 + $0x18] sm:$0xff] %vm1263_vm2, %v1222_v38  ;;  %1264 = vst.msk [vmem:[%s2191_s2] sm:$0xff] %vm1263_vm2, %v1216_v59 }
 0x18e   :  { %v1220_v12 = vpop.permute.xlu1 %1219 }
 0x18f   :  { %1266 = vst.msk [vmem:[%s2191_s2 + $0x10] sm:$0xff] %vm1263_vm2, %v1220_v12 }
 0x190   :  { %v1224_v13 = vpop.permute.xlu0 %1223 }
 0x191   :  { %1268 = vst.msk [vmem:[%s2191_s2 + $0x20] sm:$0xff] %vm1263_vm2, %v1224_v13 }
 0x192   :  { %v1226_v54 = vpop.permute.xlu1 %1225 }
 0x193   :  { %1269 = vst.msk [vmem:[%s2191_s2 + $0x28] sm:$0xff] %vm1263_vm2, %v1226_v54 }
 0x194   :  { %v1228_v16 = vpop.permute.xlu0 %1227 }
 0x195   :  { %1270 = vst.msk [vmem:[%s2191_s2 + $0x30] sm:$0xff] %vm1263_vm2, %v1228_v16 }
 0x196   :  { %v1230_v20 = vpop.permute.xlu1 %1229 }
 0x197   :  { %1271 = vst.msk [vmem:[%s2191_s2 + $0x38] sm:$0xff] %vm1263_vm2, %v1230_v20 }
 0x198   :  { %v1232_v48 = vpop.permute.xlu0 %1231 }
 0x199   :  { %1272 = vst.msk [vmem:[%s2191_s2 + $0x40] sm:$0xff] %vm1263_vm2, %v1232_v48 }
 0x19a   :  { %v1234_v6 = vpop.permute.xlu1 %1233 }
 0x19b   :  { %1273 = vst.msk [vmem:[%s2191_s2 + $0x48] sm:$0xff] %vm1263_vm2, %v1234_v6 }
 0x19c   :  { %v1236_v22 = vpop.permute.xlu0 %1235 }
 0x19d   :  { %1274 = vst.msk [vmem:[%s2191_s2 + $0x50] sm:$0xff] %vm1263_vm2, %v1236_v22 }
 0x19e   :  { %v1238_v40 = vpop.permute.xlu1 %1237 }
 0x19f   :  { %1275 = vst.msk [vmem:[%s2191_s2 + $0x58] sm:$0xff] %vm1263_vm2, %v1238_v40 }
 0x1a0   :  { %v1240_v33 = vpop.permute.xlu0 %1239 }
 0x1a1   :  { %1276 = vst.msk [vmem:[%s2191_s2 + $0x60] sm:$0xff] %vm1263_vm2, %v1240_v33 }
 0x1a2   :  { %v1242_v57 = vpop.permute.xlu1 %1241 }
 0x1a3   :  { %1277 = vst.msk [vmem:[%s2191_s2 + $0x68] sm:$0xff] %vm1263_vm2, %v1242_v57 }
 0x1a4   :  { %v1244_v19 = vpop.permute.xlu0 %1243 }
 0x1a5   :  { %1278 = vst.msk [vmem:[%s2191_s2 + $0x70] sm:$0xff] %vm1263_vm2, %v1244_v19 }
 0x1a6   :  { %v1246_v61 = vpop.permute.xlu1 %1245 }
 0x1a7   :  { %1279 = vst.msk [vmem:[%s2191_s2 + $0x78] sm:$0xff] %vm1263_vm2, %v1246_v61 }

</bundles_post_ra>
